<compile_context>
chip_gen: v7x
topology: tpu7x:2x2x1
jax: 0.10.0
libtpu: 0.0.40
codegen_flags: <defaults>
</compile_context>

<pallas_src>
import numpy as np
import jax
import jax.numpy as jnp
from jax.experimental import pallas as pl
from jax.experimental.pallas import tpu as pltpu


def _round_up(n, m):
    return ((n + m - 1) // m) * m


def _make_kernel(fuse_l2: bool, hidden: int):
    """Kernel factory; `fuse_l2` and `hidden` are static (trace-time) config."""

    def kernel(x_ref, w1_ref, b1_ref, w2_ref, b2_ref, hw_ref, hb_ref, out_ref):
        x = x_ref[...]

        # Fused layer 1: [Tb, D] @ [D, 2H] -> [Tb, 2H] (actor lanes | critic lanes).
        h1 = jnp.tanh(
            jnp.dot(x, w1_ref[...], preferred_element_type=jnp.float32)
            + b1_ref[...])

        # Layer 2.
        if fuse_l2:
            # Block-diagonal [2H, 2H]: one full-lane MXU pass (only used when 2H <= 128).
            z2 = jnp.dot(h1.astype(w2_ref.dtype), w2_ref[...],
                         preferred_element_type=jnp.float32)
        else:
            # Stacked [2, H, H]: two dots, no wasted zero blocks.
            h1c = h1.astype(w2_ref.dtype)
            za = jnp.dot(h1c[:, :hidden], w2_ref[0],
                         preferred_element_type=jnp.float32)
            zc = jnp.dot(h1c[:, hidden:], w2_ref[1],
                         preferred_element_type=jnp.float32)
            z2 = jnp.concatenate([za, zc], axis=-1)
        h2 = jnp.tanh(z2 + b2_ref[...])

        # Critic head (hidden -> 1): VPU multiply + lane reduction.  hw is a
        # [1, 2H] f32 row with zeros on the actor lanes; hb is an SMEM scalar.
        value = jnp.sum(h2 * hw_ref[...], axis=-1, keepdims=True) + hb_ref[0, 0]

        # Lane-dense output slab: lanes [0,H) = actor hidden, [H,2H) = value.
        lane = jax.lax.broadcasted_iota(jnp.int32, h2.shape, dimension=1)
        out_ref[...] = jnp.where(lane < hidden, h2, value).astype(out_ref.dtype)

    return kernel


def _default_tile_b(B):
    B8 = _round_up(max(B, 1), 8)
    if B < 16:
        return B8  # single tile; nothing worth splitting
    # >= 2 tiles so both v7x TensorCores engage; cap at 1024 rows (mem-bound
    # tiling saturates ~85% of HBM roofline by 512-1024-row tiles, vs ~30% at 128).
    return min(1024, _round_up(pl.cdiv(B, 2), 8))


def mlpbase_forward(x, packed, *, tile_b=None, use_bf16_dots=False):
    """x: [B, num_inputs] f32. Returns (value [B,1], hidden_actor [B,H])."""
    B, D = x.shape
    two_h = packed["w1"].shape[1]
    H = two_h // 2
    fuse_l2 = packed["w2"].ndim == 2

    if tile_b is None:
        tile_b = _default_tile_b(B)
    tile_b = max(8, _round_up(int(tile_b), 8))
    grid_b = pl.cdiv(B, tile_b)
    B_pad = grid_b * tile_b

    w1, w2 = packed["w1"], packed["w2"]
    if use_bf16_dots:
        # TODO(synk): only enable on v6e/v7x and only if the RL policy
        # tolerates bf16 matmul operands (breaks exact-f32 parity).
        x = x.astype(jnp.bfloat16)
        w1 = w1.astype(jnp.bfloat16)
        w2 = w2.astype(jnp.bfloat16)

    if B_pad != B:
        x = jnp.pad(x, ((0, B_pad - B), (0, 0)))

    const2 = lambda i: (0, 0)
    w2_spec = (pl.BlockSpec(w2.shape, const2) if fuse_l2
               else pl.BlockSpec(w2.shape, lambda i: (0, 0, 0)))

    # Advisory cost estimate: 2 matmuls + head reduction + bias adds, 2 tanh layers.
    flops = B_pad * (2 * D * two_h + 2 * two_h * two_h + 4 * two_h)
    weight_bytes = sum(int(a.size) * a.dtype.itemsize
                       for a in (w1, packed["b1"], w2, packed["b2"],
                                 packed["hw"], packed["hb"]))
    cost = pl.CostEstimate(
        flops=int(flops),
        transcendentals=int(2 * B_pad * two_h),
        bytes_accessed=int(int(x.size) * x.dtype.itemsize
                           + B_pad * two_h * 4 + weight_bytes))

    out = pl.pallas_call(
        _make_kernel(fuse_l2, H),
        out_shape=jax.ShapeDtypeStruct((B_pad, two_h), jnp.float32),
        grid=(grid_b,),
        in_specs=[
            pl.BlockSpec((tile_b, D), lambda i: (i, 0)),        # x batch tile
            pl.BlockSpec(w1.shape, const2),                     # fused W1 [D, 2H]
            pl.BlockSpec(packed["b1"].shape, const2),           # fused b1 [1, 2H]
            w2_spec,                                            # W2 (fused or stacked)
            pl.BlockSpec(packed["b2"].shape, const2),           # fused b2 [1, 2H]
            pl.BlockSpec(packed["hw"].shape, const2),           # head row  [1, 2H]
            pl.BlockSpec(memory_space=pltpu.MemorySpace.SMEM),  # head bias scalar
        ],
        out_specs=pl.BlockSpec((tile_b, two_h), lambda i: (i, 0)),
        compiler_params=pltpu.CompilerParams(
            dimension_semantics=("parallel",)),
        cost_estimate=cost,
    )(x, w1, packed["b1"], w2, packed["b2"], packed["hw"], packed["hb"])

    hidden_actor = out[:B, :H]
    value = out[:B, H:H + 1]
    return value, hidden_actor


def init_params(key, num_inputs, hidden_size):
    """Per-layer params mirroring the PyTorch module: orthogonal(sqrt(2)) weights,
    zero biases.  Stored pre-transposed as [in, out]."""
    ortho = jax.nn.initializers.orthogonal(scale=np.sqrt(2.0))
    ks = jax.random.split(key, 5)
    return {
        "aw1": ortho(ks[0], (num_inputs, hidden_size), jnp.float32),
        "ab1": jnp.zeros((1, hidden_size), jnp.float32),
        "aw2": ortho(ks[1], (hidden_size, hidden_size), jnp.float32),
        "ab2": jnp.zeros((1, hidden_size), jnp.float32),
        "cw1": ortho(ks[2], (num_inputs, hidden_size), jnp.float32),
        "cb1": jnp.zeros((1, hidden_size), jnp.float32),
        "cw2": ortho(ks[3], (hidden_size, hidden_size), jnp.float32),
        "cb2": jnp.zeros((1, hidden_size), jnp.float32),
        "hw": ortho(ks[4], (hidden_size, 1), jnp.float32),
        "hb": jnp.zeros((1, 1), jnp.float32),
    }


def pack_params(p):
    """Fuse actor/critic params into the lane-dense layout the kernel expects."""
    H = p["aw2"].shape[1]
    w1 = jnp.concatenate([p["aw1"], p["cw1"]], axis=1)              # [D, 2H]
    b1 = jnp.concatenate([p["ab1"], p["cb1"]], axis=1)              # [1, 2H]
    if 2 * H <= 128:
        # Block-diagonal fuse: one full-lane MXU pass for layer 2.
        w2 = jnp.zeros((2 * H, 2 * H), jnp.float32)
        w2 = w2.at[:H, :H].set(p["aw2"]).at[H:, H:].set(p["cw2"])
    else:
        # Larger hidden sizes: stacked weights, two dots in-kernel.
        w2 = jnp.stack([p["aw2"], p["cw2"]], axis=0)                # [2, H, H]
    b2 = jnp.concatenate([p["ab2"], p["cb2"]], axis=1)              # [1, 2H]
    hw = jnp.concatenate(
        [jnp.zeros((1, H), jnp.float32), p["hw"].T], axis=1)        # [1, 2H]
    return {"w1": w1, "b1": b1, "w2": w2, "b2": b2, "hw": hw, "hb": p["hb"]}


def mlpbase_reference(x, p):
    ha = jnp.tanh(x @ p["aw1"] + p["ab1"])
    ha = jnp.tanh(ha @ p["aw2"] + p["ab2"])
    hc = jnp.tanh(x @ p["cw1"] + p["cb1"])
    hc = jnp.tanh(hc @ p["cw2"] + p["cb2"])
    value = hc @ p["hw"] + p["hb"]
    return value, ha


if __name__ == "__main__":
    B = 8            # batch (number of envs)
    NUM_INPUTS = 32  # observation size
    HIDDEN = 64      # hidden_size (module default)

    key = jax.random.PRNGKey(0)
    k_x, k_p = jax.random.split(key)
    x = jax.random.normal(k_x, (B, NUM_INPUTS), dtype=jnp.float32)
    params = init_params(k_p, NUM_INPUTS, HIDDEN)
    packed = pack_params(params)

    value, hidden_actor = mlpbase_forward(x, packed)
    jax.block_until_ready((value, hidden_actor))

    # Sanity check against pure-JAX per-branch reference (f32 path, exact).
    value_ref, actor_ref = mlpbase_reference(x, params)
    assert value.shape == (B, 1) and hidden_actor.shape == (B, HIDDEN)
    assert jnp.allclose(value, value_ref, atol=1e-5, rtol=1e-5)
    assert jnp.allclose(hidden_actor, actor_ref, atol=1e-5, rtol=1e-5)

    # Also exercise the padded multi-tile path (B not a multiple of the tile).
    B2 = 20
    x2 = jax.random.normal(jax.random.PRNGKey(1), (B2, NUM_INPUTS), jnp.float32)
    v2, a2 = mlpbase_forward(x2, packed)
    jax.block_until_ready((v2, a2))
    v2_ref, a2_ref = mlpbase_reference(x2, params)
    assert jnp.allclose(v2, v2_ref, atol=1e-5, rtol=1e-5)
    assert jnp.allclose(a2, a2_ref, atol=1e-5, rtol=1e-5)

    print("KERNEL_OK")
</pallas_src>

<mosaic_0001>
module attributes {stable_mosaic.version = 11 : i64} {
  func.func @kernel(%arg0: i32, %arg1: memref<8x32xf32, #tpu.memory_space<vmem>>, %arg2: memref<32x128xf32, #tpu.memory_space<vmem>>, %arg3: memref<1x128xf32, #tpu.memory_space<vmem>>, %arg4: memref<128x128xf32, #tpu.memory_space<vmem>>, %arg5: memref<1x128xf32, #tpu.memory_space<vmem>>, %arg6: memref<1x128xf32, #tpu.memory_space<vmem>>, %arg7: memref<1x1xf32, #tpu.memory_space<smem>>, %arg8: memref<8x128xf32, #tpu.memory_space<vmem>>) attributes {dimension_semantics = [#tpu.dimension_semantics<parallel>], iteration_bounds = array<i64: 1>, scalar_prefetch = 0 : i64, scratch_operands = 0 : i64, tpu.core_type = #tpu.core_type<tc>, window_params = [{transform_indices = @transform_0, window_bounds = array<i64: 8, 32>}, {pipeline_mode = #tpu.pipeline_mode<synchronous>, transform_indices = @transform_1, window_bounds = array<i64: 32, 128>}, {pipeline_mode = #tpu.pipeline_mode<synchronous>, transform_indices = @transform_2, window_bounds = array<i64: 1, 128>}, {pipeline_mode = #tpu.pipeline_mode<synchronous>, transform_indices = @transform_3, window_bounds = array<i64: 128, 128>}, {pipeline_mode = #tpu.pipeline_mode<synchronous>, transform_indices = @transform_4, window_bounds = array<i64: 1, 128>}, {pipeline_mode = #tpu.pipeline_mode<synchronous>, transform_indices = @transform_5, window_bounds = array<i64: 1, 128>}, {transform_indices = @transform_6, window_bounds = array<i64: 1, 1>}, {transform_indices = @transform_7, window_bounds = array<i64: 8, 128>}]} {
    %c0 = arith.constant 0 : index
    %c0_0 = arith.constant 0 : index
    %0 = vector.load %arg1[%c0, %c0_0] : memref<8x32xf32, #tpu.memory_space<vmem>>, vector<8x32xf32>
    %c0_1 = arith.constant 0 : index
    %c0_2 = arith.constant 0 : index
    %1 = vector.load %arg2[%c0_1, %c0_2] : memref<32x128xf32, #tpu.memory_space<vmem>>, vector<32x128xf32>
    %cst = arith.constant dense<0.000000e+00> : vector<8x128xf32>
    %2 = tpu.matmul %0, %1, %cst {dimension_numbers = #tpu.dot_dimension_numbers<[1], [0], [0], [1], [0, 0, 1, 1], [], []>} : vector<8x32xf32>, vector<32x128xf32>, vector<8x128xf32> -> vector<8x128xf32>
    %c0_3 = arith.constant 0 : index
    %c0_4 = arith.constant 0 : index
    %3 = vector.load %arg3[%c0_3, %c0_4] : memref<1x128xf32, #tpu.memory_space<vmem>>, vector<1x128xf32>
    %4 = vector.broadcast %3 : vector<1x128xf32> to vector<8x128xf32>
    %5 = arith.addf %2, %4 : vector<8x128xf32>
    %6 = math.tanh %5 : vector<8x128xf32>
    %c0_5 = arith.constant 0 : index
    %c0_6 = arith.constant 0 : index
    %7 = vector.load %arg4[%c0_5, %c0_6] : memref<128x128xf32, #tpu.memory_space<vmem>>, vector<128x128xf32>
    %cst_7 = arith.constant dense<0.000000e+00> : vector<8x128xf32>
    %8 = tpu.matmul %6, %7, %cst_7 {dimension_numbers = #tpu.dot_dimension_numbers<[1], [0], [0], [1], [0, 0, 1, 1], [], []>} : vector<8x128xf32>, vector<128x128xf32>, vector<8x128xf32> -> vector<8x128xf32>
    %c0_8 = arith.constant 0 : index
    %c0_9 = arith.constant 0 : index
    %9 = vector.load %arg5[%c0_8, %c0_9] : memref<1x128xf32, #tpu.memory_space<vmem>>, vector<1x128xf32>
    %10 = vector.broadcast %9 : vector<1x128xf32> to vector<8x128xf32>
    %11 = arith.addf %8, %10 : vector<8x128xf32>
    %12 = math.tanh %11 : vector<8x128xf32>
    %c0_10 = arith.constant 0 : index
    %c0_11 = arith.constant 0 : index
    %13 = vector.load %arg6[%c0_10, %c0_11] : memref<1x128xf32, #tpu.memory_space<vmem>>, vector<1x128xf32>
    %14 = vector.broadcast %13 : vector<1x128xf32> to vector<8x128xf32>
    %15 = arith.mulf %12, %14 : vector<8x128xf32>
    %cst_12 = arith.constant dense<0.000000e+00> : vector<8xf32>
    %16 = vector.multi_reduction <add>, %15, %cst_12 [1] : vector<8x128xf32> to vector<8xf32>
    %17 = vector.shape_cast %16 : vector<8xf32> to vector<8x1xf32>
    %c0_13 = arith.constant 0 : index
    %c0_14 = arith.constant 0 : index
    %18 = memref.load %arg7[%c0_13, %c0_14] : memref<1x1xf32, #tpu.memory_space<smem>>
    %19 = vector.broadcast %18 : f32 to vector<8x1xf32>
    %20 = arith.addf %17, %19 : vector<8x1xf32>
    %21 = tpu.iota {dimensions = array<i32: 1>} : vector<8x128xi32>
    %c64_i32 = arith.constant 64 : i32
    %22 = vector.broadcast %c64_i32 : i32 to vector<8x128xi32>
    %23 = arith.cmpi slt, %21, %22 : vector<8x128xi32>
    %24 = vector.shape_cast %20 : vector<8x1xf32> to vector<8x1xf32>
    %25 = vector.broadcast %24 : vector<8x1xf32> to vector<8x128xf32>
    %26 = arith.select %23, %12, %25 : vector<8x128xi1>, vector<8x128xf32>
    %c0_15 = arith.constant 0 : index
    %c0_16 = arith.constant 0 : index
    %27 = vector.load %arg8[%c0_15, %c0_16] : memref<8x128xf32, #tpu.memory_space<vmem>>, vector<8x128xf32>
    tpu.vector_store %arg8[%c0_15, %c0_16], %26 {strides = array<i32>} : memref<8x128xf32, #tpu.memory_space<vmem>>, vector<8x128xf32>,
    return
  }
  func.func @transform_0(%arg0: i32) -> (i32, i32) {
    %c0_i32 = arith.constant 0 : i32
    %c0_i32_0 = arith.constant 0 : i32
    return %arg0, %c0_i32 : i32, i32
  }
  func.func @transform_1(%arg0: i32) -> (i32, i32) {
    %c0_i32 = arith.constant 0 : i32
    %c0_i32_0 = arith.constant 0 : i32
    %c0_i32_1 = arith.constant 0 : i32
    return %c0_i32, %c0_i32_0 : i32, i32
  }
  func.func @transform_2(%arg0: i32) -> (i32, i32) {
    %c0_i32 = arith.constant 0 : i32
    %c0_i32_0 = arith.constant 0 : i32
    %c0_i32_1 = arith.constant 0 : i32
    return %c0_i32, %c0_i32_0 : i32, i32
  }
  func.func @transform_3(%arg0: i32) -> (i32, i32) {
    %c0_i32 = arith.constant 0 : i32
    %c0_i32_0 = arith.constant 0 : i32
    %c0_i32_1 = arith.constant 0 : i32
    return %c0_i32, %c0_i32_0 : i32, i32
  }
  func.func @transform_4(%arg0: i32) -> (i32, i32) {
    %c0_i32 = arith.constant 0 : i32
    %c0_i32_0 = arith.constant 0 : i32
    %c0_i32_1 = arith.constant 0 : i32
    return %c0_i32, %c0_i32_0 : i32, i32
  }
  func.func @transform_5(%arg0: i32) -> (i32, i32) {
    %c0_i32 = arith.constant 0 : i32
    %c0_i32_0 = arith.constant 0 : i32
    %c0_i32_1 = arith.constant 0 : i32
    return %c0_i32, %c0_i32_0 : i32, i32
  }
  func.func @transform_6(%arg0: i32) -> (i32, i32) {
    %c0_i32 = arith.constant 0 : i32
    %c0_i32_0 = arith.constant 0 : i32
    %c0_i32_1 = arith.constant 0 : i32
    return %c0_i32, %c0_i32_0 : i32, i32
  }
  func.func @transform_7(%arg0: i32) -> (i32, i32) {
    %c0_i32 = arith.constant 0 : i32
    %c0_i32_0 = arith.constant 0 : i32
    return %arg0, %c0_i32 : i32, i32
  }
}

</mosaic_0001>

<bundles_post_ra>
// kernel: tpu_custom_call.1
= control target key start
LH: loop header
LB: loop body
LE: loop exit
PB: predicated region body
PF: predicated region fallthrough
CT: control target
= control target key end

     0   :  { %13 = vsyncpa [#allocation4], 0  ;;  %s606_s0 = inlined_call_operand.hbm [shape: f32[8,32], index: 0, kind: input, shape index: {}]   ;;  %s607_s1 = inlined_call_operand.hbm [shape: f32[32,128], index: 1, kind: input, shape index: {}]   ;;  %s608_s2 = inlined_call_operand.vmem [shape: f32[1,128], index: 2, kind: input, shape index: {}]   ;;  %s609_s3 = inlined_call_operand.hbm [shape: f32[128,128], index: 3, kind: input, shape index: {}]   ;;  %s610_s4 = inlined_call_operand.vmem [shape: f32[1,128], index: 4, kind: input, shape index: {}]   ;;  %s611_s5 = inlined_call_operand.vmem [shape: f32[1,128], index: 5, kind: input, shape index: {}]   ;;  %s612_s6 = inlined_call_operand.<no memory space> [shape: f32[1,1], index: 6, kind: input, shape index: {}]   ;;  %s613_s7 = inlined_call_operand.hbm [shape: f32[8,128], index: 7, kind: output, shape index: {}]  }
   0x1   :  { %14 = vsyncpa [#allocation7], 0 }
   0x2   :  { %15 = vsyncpa [#allocation5], 0  ;;  %s491_s24 = smov [#allocation6]   ;;  %s397_s28 = scalar_lea.hbm %s607_s1, 512 }
   0x3   :  { %s31_s25 = sshll.u32 %s491_s24, 4  ;;  %p398_p0 = scmp.ne.s32.totalorder %s607_s1, %s397_s28  ;;  %s32_s25 = int_to_ptr.vmem [resolvable:$true] %s31_s25 }
   0x4   :  { %p401_p1 = scmp.lt.u32.totalorder %s397_s28, %s607_s1 }
   0x6   :  { %p403_p2 = pnand %p401_p1, %p398_p0 }
   0x8   :  { %406 = shalt.err (!%p403_p2)
}
   0x9   :  { %s407_s10 = scalar_lea.vmem %s32_s25, 512  ;;  %p412_p4 = scmp.lt.s32.totalorder %s32_s25, %s32_s25 }
   0xa   :  { %p408_p3 = scmp.ne.s32.totalorder %s32_s25, %s407_s10  ;;  %p413_p5 = scmp.lt.s32.totalorder %s407_s10, %s407_s10 }
   0xc   :  { %p414_p6 = por %p413_p5, %p412_p4 }
   0xe   :  { %p415_p7 = pnand %p414_p6, %p408_p3 }
  0x10   :  { %418 = shalt.err (!%p415_p7)
}
  0x11   :  { %s492_s11 = smov 128   ;;  %s493_s12 = smov 8  }
  0x12   :  { %37 = dma.hbm_to_vmem [thread:$0]  %s607_s1, 512, %s32_s25, [#allocation7], %s492_s11, %s492_s11, %s493_s12  }
  0x13   :  { %s494_s15 = smov [#allocation3]   ;;  %s495_s17 = smov [#allocation8]  }
  0x14   :  { %s22_s16 = sshll.u32 %s494_s15, 4  ;;  %s45_s18 = sshll.u32 %s495_s17, 4  ;;  %s23_s16 = int_to_ptr.vmem [resolvable:$true] %s22_s16  ;;  %s46_s18 = int_to_ptr.vmem [resolvable:$true] %s45_s18 }
  0x15   :  { %s419_s21 = scalar_lea.hbm %s606_s0, 128 }
  0x16   :  { %p420_p8 = scmp.ne.s32.totalorder %s606_s0, %s419_s21  ;;  %p423_p9 = scmp.lt.u32.totalorder %s419_s21, %s606_s0 }
  0x18   :  { %p425_p10 = pnand %p423_p9, %p420_p8 }
  0x1a   :  { %428 = shalt.err (!%p425_p10)
}
  0x1b   :  { %s429_s1 = scalar_lea.vmem %s23_s16, 128  ;;  %p434_p12 = scmp.lt.s32.totalorder %s23_s16, %s23_s16 }
  0x1c   :  { %p430_p11 = scmp.ne.s32.totalorder %s23_s16, %s429_s1  ;;  %p435_p13 = scmp.lt.s32.totalorder %s429_s1, %s429_s1 }
  0x1e   :  { %p436_p0 = por %p435_p13, %p434_p12 }
  0x20   :  { %p437_p1 = pnand %p436_p0, %p430_p11 }
  0x22   :  { %440 = shalt.err (!%p437_p1)
}
  0x23   :  { %25 = dma.hbm_to_vmem [thread:$0]  %s606_s0, 128, %s23_s16, [#allocation4]  }
  0x24   :  { %s441_s30 = scalar_lea.hbm %s609_s3, 2048 }
  0x25   :  { %p442_p2 = scmp.ne.s32.totalorder %s609_s3, %s441_s30  ;;  %p445_p3 = scmp.lt.u32.totalorder %s441_s30, %s609_s3 }
  0x27   :  { %p447_p4 = pnand %p445_p3, %p442_p2 }
  0x29   :  { %450 = shalt.err (!%p447_p4)
}
  0x2a   :  { %s451_s14 = scalar_lea.vmem %s46_s18, 2048  ;;  %p456_p6 = scmp.lt.s32.totalorder %s46_s18, %s46_s18 }
  0x2b   :  { %p452_p5 = scmp.ne.s32.totalorder %s46_s18, %s451_s14  ;;  %p457_p7 = scmp.lt.s32.totalorder %s451_s14, %s451_s14 }
  0x2d   :  { %p458_p8 = por %p457_p7, %p456_p6 }
  0x2f   :  { %p459_p9 = pnand %p458_p8, %p452_p5 }
  0x31   :  { %462 = shalt.err (!%p459_p9)
}
  0x32   :  { %51 = dma.hbm_to_vmem [thread:$0]  %s609_s3, 2048, %s46_s18, [#allocation7], %s492_s11, %s492_s11, %s493_s12  }
  0x33   :  { %485 = dma.done.wait [#allocation4], 128  }
  0x34   :  { %486 = vsyncadd [#allocation4], 4294967168 }
  0x35   :  { %487 = dma.done.wait [#allocation7], 2560  }
  0x36   :  { %488 = vsyncadd [#allocation7], 4294964736  ;;  %v496_v0 = vmov 0.0|0.0   ;;  %vm497_vm0 = vmmov 0   ;;  %v498_v1 = vmov 0.0   ;;  %v68_v2 = vld [vmem:[#allocation6] sm:$0xff]  ;;  %v261_v45 = vlaneseq }
  0x37   :  { %354 = vmatprep.subr.bf16.mxu0 %v496_v0  ;;  %316 = vmatprep.mubr.msk.f32.mxu0 %vm497_vm0, %v498_v1  ;;  %v69_v3 = vld [vmem:[#allocation6 + $0x8] sm:$0xff]  ;;  %v70_v4 = vld [vmem:[#allocation6 + $0x10] sm:$0xff]  ;;  %v71_v6 = vld [vmem:[#allocation6 + $0x18] sm:$0xff]  ;;  %vm79_vm1 = vcmask 261120   ;;  %v259_v47 = vstv %s612_s6  ;;  %s499_s20 = smov [#allocation9]  }
  0x38   :  { %360 = vmatprep.subr.bf16.mxu1 %v496_v0  ;;  %351 = vmatprep.mubr.msk.f32.mxu1 %vm497_vm0, %v498_v1  ;;  %v355_v5 = vpack.c.bf16 %v69_v3, %v68_v2  ;;  %v154_v7 = vld [vmem:[#allocation8] sm:$0xff]  ;;  %v155_v8 = vld [vmem:[#allocation8 + $0x8] sm:$0xff]  ;;  %v156_v9 = vld [vmem:[#allocation8 + $0x10] sm:$0xff]  ;;  %v358_v11 = vpack.c.bf16 %v71_v6, %v70_v4  ;;  %v262_v46 = vand.u32 127, %v261_v45  ;;  %s272_s21 = sshll.u32 %s499_s20, 4  ;;  %s273_s21 = int_to_ptr.vmem [resolvable:$true] %s272_s21 }
  0x39   :  { %v157_v10 = vld [vmem:[#allocation8 + $0x18] sm:$0xff]  ;;  %v361_v12 = vpack.c.bf16 %v155_v8, %v154_v7  ;;  %v158_v14 = vld [vmem:[#allocation8 + $0x20] sm:$0xff]  ;;  %v159_v15 = vld [vmem:[#allocation8 + $0x28] sm:$0xff]  ;;  %p468_p11 = scmp.lt.s32.totalorder %s273_s21, %s273_s21 }
  0x3a   :  { %356 = vmatpush3.bf16.msra.mxu0 %v355_v5  ;;  %v364_v13 = vpack.c.bf16 %v157_v10, %v156_v9  ;;  %v67_v16 = vld [vmem:[#allocation3] sm:$0xff]  ;;  %v367_v17 = vpack.c.bf16 %v159_v15, %v158_v14  ;;  %v160_v18 = vld [vmem:[#allocation8 + $0x30] sm:$0xff]  ;;  %v162_v21 = vld [vmem:[#allocation8 + $0x40] sm:$0xff]  ;;  %vm263_vm2 = vcmp.lt.s32.totalorder %v262_v46, 64 }
  0x3b   :  { %357 = vmatprep.subr.bf16.mxu0 %v496_v0  ;;  %362 = vmatpush3.bf16.msra.mxu1 %v361_v12  ;;  %v161_v19 = vld [vmem:[#allocation8 + $0x38] sm:$0xff]  ;;  %v163_v22 = vld [vmem:[#allocation8 + $0x48] sm:$0xff]  ;;  %v164_v24 = vld [vmem:[#allocation8 + $0x50] sm:$0xff] }
  0x3c   :  { %363 = vmatprep.subr.bf16.mxu1 %v496_v0  ;;  %v370_v20 = vpack.c.bf16 %v161_v19, %v160_v18  ;;  %v373_v23 = vpack.c.bf16 %v163_v22, %v162_v21  ;;  %v165_v25 = vld [vmem:[#allocation8 + $0x58] sm:$0xff]  ;;  %v166_v27 = vld [vmem:[#allocation8 + $0x60] sm:$0xff]  ;;  %v167_v28 = vld [vmem:[#allocation8 + $0x68] sm:$0xff] }
  0x3d   :  { %v376_v26 = vpack.c.bf16 %v165_v25, %v164_v24  ;;  %v379_v29 = vpack.c.bf16 %v167_v28, %v166_v27  ;;  %v168_v30 = vld [vmem:[#allocation8 + $0x70] sm:$0xff]  ;;  %v169_v31 = vld [vmem:[#allocation8 + $0x78] sm:$0xff] }
  0x3e   :  { %359 = vmatpush3.bf16.msra.mxu0 %v358_v11  ;;  %v382_v32 = vpack.c.bf16 %v169_v31, %v168_v30  ;;  %v282_v33 = vld [vmem:[%s608_s2] ss:$0 sm:$0xff] }
  0x3f   :  { %365 = vmatpush3.bf16.msra.mxu1 %v364_v13  ;;  %v284_v38 = vld [vmem:[%s610_s4] ss:$0 sm:$0xff]  ;;  %s463_s4 = scalar_lea.vmem %s273_s21, 128 }
  0x40   :  { %366 = vmatprep.subr.bf16.mxu1 %v496_v0  ;;  %v285_v42 = vld [vmem:[%s611_s5] ss:$0 sm:$0xff]  ;;  %p464_p10 = scmp.ne.s32.totalorder %s273_s21, %s463_s4  ;;  %p469_p12 = scmp.lt.s32.totalorder %s463_s4, %s463_s4 }
  0x41   :  { %317 = vmatmul.mubr.msk.f32.vlgmr.msra.gmra.mrb[0].mxu0 %vm79_vm1, %v67_v16 }
  0x42   :  { %p470_p13 = por %p469_p12, %p468_p11 }
  0x43   :  { %368 = vmatpush3.bf16.msra.mxu1 %v367_v17 }
  0x44   :  { %369 = vmatprep.subr.bf16.mxu1 %v496_v0  ;;  %p471_p0 = pnand %p470_p13, %p464_p10 }
  0x47   :  { %371 = vmatpush3.bf16.msra.mxu1 %v370_v20 }
  0x48   :  { %372 = vmatprep.subr.bf16.mxu1 %v496_v0 }
  0x4b   :  { %374 = vmatpush3.bf16.msra.mxu1 %v373_v23 }
  0x4c   :  { %375 = vmatprep.subr.bf16.mxu1 %v496_v0 }
  0x4f   :  { %377 = vmatpush3.bf16.msra.mxu1 %v376_v26 }
  0x50   :  { %378 = vmatprep.subr.bf16.mxu1 %v496_v0 }
  0x53   :  { %380 = vmatpush3.bf16.msra.mxu1 %v379_v29 }
  0x54   :  { %381 = vmatprep.subr.bf16.mxu1 %v496_v0 }
  0x57   :  { %383 = vmatpush3.bf16.msra.mxu1 %v382_v32 }
 0x114   :  { %v149_v34 = vpop.f32.mrb[0].mxu0 }
 0x115   :  { %v150_v35 = vadd.f32 %v282_v33, %v149_v34  ;;  %v318_v36 = vpop.f32.mrb[1].mxu0 }
 0x117   :  { %393 = vtanh.f32 %v150_v35 }
 0x121   :  { %v394_v37 = vpop.eup %393 }
 0x122   :  { %352 = vmatmul.mubr.f32.vlgmr.msra.gmra.mrb[0].mxu1 %v394_v37 }
 0x1f5   :  { %v243_v39 = vpop.f32.mrb[0].mxu1 }
 0x1f6   :  { %v244_v40 = vadd.f32 %v284_v38, %v243_v39  ;;  %v353_v41 = vpop.f32.mrb[1].mxu1 }
 0x1f8   :  { %395 = vtanh.f32 %v244_v40 }
 0x202   :  { %v396_v43 = vpop.eup %395 }
 0x203   :  { %v255_v44 = vmul.f32 %v396_v43, %v285_v42 }
 0x205   :  { %256 = vadd.xlane.f32.xlu0 %v255_v44 }
 0x292   :  { %v257_v48 = vpop.xlane.xlu0 %256 }
 0x293   :  { %v260_v49 = vadd.f32 %v259_v47, %v257_v48 }
 0x295   :  { %v264_v50 = vsel %vm263_vm2, %v396_v43, %v260_v49 }
 0x296   :  { %265 = vst [vmem:[#allocation9] sm:$0xff] %v264_v50 }
 0x297   :  { %474 = shalt.err (!%p471_p0)
}
 0x298   :  { %s475_s23 = scalar_lea.hbm %s613_s7, 128 }
 0x299   :  { %p476_p1 = scmp.ne.s32.totalorder %s613_s7, %s475_s23  ;;  %p479_p2 = scmp.lt.u32.totalorder %s475_s23, %s613_s7 }
 0x29b   :  { %p481_p3 = pnand %p479_p2, %p476_p1 }
 0x29d   :  { %484 = shalt.err (!%p481_p3)
}
 0x29e   :  { %275 = dma.vmem_to_hbm [thread:$0]  %s273_s21, 128, %s613_s7, [#allocation5]  }
 0x29f   :  { %489 = dma.done.wait [#allocation5], 128  }
 0x2a0   :  { %490 = vsyncadd [#allocation5], 4294967168 }
 0x2a1   :  { %279 = vsyncpa [#allocation4], 1 }
 0x2a2   :  { %280 = vsyncpa [#allocation7], 1 }
 0x2a3   :  { %281 = vsyncpa [#allocation5], 1 }

</bundles_post_ra>
